<compile_context>
chip_gen: v7x
topology: tpu7x:2x2x1
jax: 0.10.0
libtpu: 0.0.40
codegen_flags: <defaults>
</compile_context>

<pallas_src>
import jax
import jax.numpy as jnp
import numpy as np
from jax.experimental import pallas as pl
from jax.experimental.pallas import tpu as pltpu

BN_EPS = 1e-5


# ----------------------------------------------------------------------------
# Fused DecoderBlock kernel.
# All activations use the lane-packed layout (N, H, W*C); lane index = w*C + c.
# ----------------------------------------------------------------------------
def decoder_block_kernel(x1d_ref, x2_ref, bup_ref, me_ref, mo_ref, biasm_ref,
                         a1a_ref, a1b_ref, a2_ref,
                         g1_ref, b1_ref, g2_ref, b2_ref,
                         selm_ref, selmT_ref, selo_ref, seloT_ref,
                         out_ref, acc_ref):
    f32 = jnp.float32
    N, H, _ = x2_ref.shape
    Lup = bup_ref.shape[2]           # (2*W1)*Cup lanes of the upsampled x1
    Cmid = selm_ref.shape[1]
    Lmid = selmT_ref.shape[1]        # W2*Cmid
    Lout = seloT_ref.shape[1]        # W2*Cout
    W = Lmid // Cmid
    R = N * H
    inv_count = 1.0 / float(R * W)   # BN count over (N, H, W)

    def bn_relu(a, sel_ref, selT_ref, g_ref, b_ref):
        # a: (R, L) f32.  Single-pass batch statistics, gamma/beta folded into scale/shift.
        s1 = jnp.sum(a, axis=0, keepdims=True)              # (1, L)
        s2 = jnp.sum(a * a, axis=0, keepdims=True)          # (1, L)
        mean_c = jnp.dot(s1, sel_ref[...], preferred_element_type=f32) * inv_count
        ex2_c = jnp.dot(s2, sel_ref[...], preferred_element_type=f32) * inv_count
        var_c = jnp.maximum(ex2_c - mean_c * mean_c, 0.0)   # (1, C)
        scale_c = jax.lax.rsqrt(var_c + BN_EPS) * g_ref[...]
        shift_c = b_ref[...] - mean_c * scale_c
        scale_l = jnp.dot(scale_c, selT_ref[...], preferred_element_type=f32)   # (1, L)
        shift_l = jnp.dot(shift_c, selT_ref[...], preferred_element_type=f32)
        return jnp.maximum(a * scale_l + shift_l, 0.0)

    # ---- ConvTranspose2d(k=2, s=2): two banded matmuls + row-parity select ----
    # x1d rows are the input rows duplicated (even/odd output row) and already placed
    # at the F.pad H offset; me/mo are static parity/validity masks, biasm the masked bias.
    x1m = x1d_ref[...].reshape(R, x1d_ref.shape[2])
    q0 = jnp.dot(x1m, bup_ref[0], preferred_element_type=f32).reshape(N, H, Lup)
    q1 = jnp.dot(x1m, bup_ref[1], preferred_element_type=f32).reshape(N, H, Lup)
    x1up = q0 * me_ref[...] + q1 * mo_ref[...] + biasm_ref[...]
    x1up = x1up.astype(jnp.bfloat16)

    # ---- conv1 (3x3, pad=1, no bias): one deep-K banded matmul per concat source ----
    # Columns of a1a/a1b are grouped by kernel row di: [di=0 | di=1 | di=2].
    p = jnp.dot(x2_ref[...].reshape(R, x2_ref.shape[2]), a1a_ref[...],
                preferred_element_type=f32)
    p = p + jnp.dot(x1up.reshape(R, Lup), a1b_ref[...],
                    preferred_element_type=f32)
    p = p.reshape(N, H, 3 * Lmid)
    # H halo: out(h) = P1(h) + P0(h-1) + P2(h+1)  (zero rows at the H boundary)
    acc_ref[...] = p[:, :, Lmid:2 * Lmid]
    acc_ref[:, 1:, :] = acc_ref[:, 1:, :] + p[:, :H - 1, 0:Lmid]
    acc_ref[:, :H - 1, :] = acc_ref[:, :H - 1, :] + p[:, 1:, 2 * Lmid:3 * Lmid]
    a = acc_ref[...].reshape(R, Lmid)

    # ---- BatchNorm1 (training-mode batch stats over N,H,W) + ReLU ----
    y = bn_relu(a, selm_ref, selmT_ref, g1_ref, b1_ref).astype(jnp.bfloat16)

    # ---- conv2 (3x3): one banded matmul, H halo accumulated directly in out_ref ----
    p = jnp.dot(y, a2_ref[...], preferred_element_type=f32).reshape(N, H, 3 * Lout)
    out_ref[...] = p[:, :, Lout:2 * Lout]
    out_ref[:, 1:, :] = out_ref[:, 1:, :] + p[:, :H - 1, 0:Lout]
    out_ref[:, :H - 1, :] = out_ref[:, :H - 1, :] + p[:, 1:, 2 * Lout:3 * Lout]
    a = out_ref[...].reshape(R, Lout)

    # ---- BatchNorm2 + ReLU ----
    out_ref[...] = bn_relu(a, selo_ref, seloT_ref, g2_ref, b2_ref).reshape(N, H, Lout)


# ----------------------------------------------------------------------------
# Weight / mask preparation (trace-time, tiny).
# ----------------------------------------------------------------------------
def _conv_band_matrices(w_kkio, w_in, w_out, w_offset):
    # w_kkio: (3, 3, Ci, Co) = (di, dj, ci, co).
    # Returns (w_in*Ci, 3*w_out*Co): banded matrix that applies the 1x3 W-conv (with zero
    # padding and an optional W placement offset) for each kernel row di.
    kh, kw, ci, co = w_kkio.shape
    wj = np.arange(w_in)[:, None]
    w = np.arange(w_out)[None, :]
    dj = wj + w_offset - w + 1                       # padding=1
    valid = ((dj >= 0) & (dj < kw)).astype(np.float32)
    djc = np.clip(dj, 0, kw - 1)
    blocks = w_kkio[:, djc] * valid[None, :, :, None, None]   # (kh, w_in, w_out, ci, co)
    blocks = jnp.transpose(blocks, (1, 3, 0, 2, 4))           # (w_in, ci, kh, w_out, co)
    return blocks.reshape(w_in * ci, kh * w_out * co)


def _upsample_band_matrices(w_up, w1):
    # w_up: (Cin, Cup, 2, 2) PyTorch ConvTranspose2d layout.
    # Returns (2, W1*Cin, 2*W1*Cup): one banded matrix per output row parity.
    cin, cup, kh, kw = w_up.shape
    j = np.arange(w1)[:, None]
    jj = np.arange(kw * w1)[None, :]
    dj = jj - 2 * j
    valid = ((dj >= 0) & (dj < kw)).astype(np.float32)
    djc = np.clip(dj, 0, kw - 1)
    w_t = jnp.transpose(w_up, (2, 3, 0, 1))                    # (kh, kw, Cin, Cup)
    blocks = w_t[:, djc] * valid[None, :, :, None, None]       # (kh, w1, 2*w1, Cin, Cup)
    blocks = jnp.transpose(blocks, (0, 1, 3, 2, 4))            # (kh, w1, Cin, 2*w1, Cup)
    return blocks.reshape(kh, w1 * cin, kw * w1 * cup)


def _channel_selectors(w, c):
    # 0/1 matrices mapping lane index (w*C + c) <-> channel c for BN reductions.
    lane_ch = np.arange(w * c) % c
    sel = (lane_ch[:, None] == np.arange(c)[None, :]).astype(np.float32)   # (W*C, C)
    return jnp.asarray(sel), jnp.asarray(np.ascontiguousarray(sel.T))      # and (C, W*C)


# ----------------------------------------------------------------------------
# DecoderBlock forward (NCHW in / NCHW out, matching PyTorch)
# ----------------------------------------------------------------------------
@jax.jit
def decoder_block_forward(x1_nchw, x2_nchw, params):
    bf16 = jnp.bfloat16
    N, cin, h1, w1 = x1_nchw.shape
    _, cup, h2, w2 = x2_nchw.shape
    assert cup == cin // 2
    w_up, b_up = params["w_up"], params["b_up"]
    w1_oihw, w2_oihw = params["w1_oihw"], params["w2_oihw"]
    g1, beta1, g2, beta2 = params["g1"], params["beta1"], params["g2"], params["beta2"]
    cmid, ccat = w1_oihw.shape[0], w1_oihw.shape[1]
    cout = w2_oihw.shape[0]
    assert ccat == cin
    h2raw, w2raw = 2 * h1, 2 * w1
    diff_h, diff_w = h2 - h2raw, w2 - w2raw
    dh0, dw0 = diff_h // 2, diff_w // 2
    lup = w2raw * cup
    lmid, lout = w2 * cmid, w2 * cout

    # Activations -> lane-packed (N, H, W*C), bf16 MXU operands.
    x1_lane = jnp.transpose(x1_nchw, (0, 2, 3, 1)).reshape(N, h1, w1 * cin)
    x1_dup = jnp.repeat(x1_lane, 2, axis=1)                   # each input row feeds 2 output rows
    x1_dup = jnp.pad(x1_dup, ((0, 0), (dh0, h2 - h2raw - dh0), (0, 0))).astype(bf16)
    x2_lane = jnp.transpose(x2_nchw, (0, 2, 3, 1)).reshape(N, h2, w2 * cup).astype(bf16)

    # Banded weight matrices (W shift + W zero-pad + F.pad W offset folded in), bf16.
    bup = _upsample_band_matrices(w_up, w1).astype(bf16)                     # (2, W1*Cin, Lup)
    w1_kkio = jnp.transpose(w1_oihw, (2, 3, 1, 0))                           # (3,3,Ccat,Cmid)
    a1a = _conv_band_matrices(w1_kkio[:, :, :cup, :], w2, w2, 0).astype(bf16)
    a1b = _conv_band_matrices(w1_kkio[:, :, cup:, :], w2raw, w2, dw0).astype(bf16)
    w2_kkio = jnp.transpose(w2_oihw, (2, 3, 1, 0))                           # (3,3,Cmid,Cout)
    a2 = _conv_band_matrices(w2_kkio, w2, w2, 0).astype(bf16)

    # Static row masks: parity select for the k=2,s=2 transposed conv + F.pad H placement.
    hh = np.arange(h2)
    valid_h = (hh >= dh0) & (hh < dh0 + h2raw)
    even_h = valid_h & (((hh - dh0) % 2) == 0)
    odd_h = valid_h & (((hh - dh0) % 2) == 1)
    me = jnp.asarray(np.broadcast_to(even_h[None, :, None], (1, h2, lup)).astype(np.float32))
    mo = jnp.asarray(np.broadcast_to(odd_h[None, :, None], (1, h2, lup)).astype(np.float32))
    biasm = (jnp.tile(b_up, w2raw)[None, None, :] *
             jnp.asarray(valid_h.astype(np.float32))[None, :, None])        # (1, h2, lup)

    # Per-channel BN affine params + channel-reduction selectors (scale/shift folded in-kernel).
    g1_c, b1_c = g1[None, :].astype(jnp.float32), beta1[None, :].astype(jnp.float32)
    g2_c, b2_c = g2[None, :].astype(jnp.float32), beta2[None, :].astype(jnp.float32)
    selm, selmT = _channel_selectors(w2, cmid)
    selo, seloT = _channel_selectors(w2, cout)

    vmem = pl.BlockSpec(memory_space=pltpu.MemorySpace.VMEM)
    out_lane = pl.pallas_call(
        decoder_block_kernel,
        out_shape=jax.ShapeDtypeStruct((N, h2, lout), jnp.float32),
        in_specs=[vmem] * 17,
        out_specs=vmem,
        scratch_shapes=[pltpu.VMEM((N, h2, lmid), jnp.float32)],
        compiler_params=pltpu.CompilerParams(vmem_limit_bytes=32 * 1024 * 1024),
    )(x1_dup, x2_lane, bup, me, mo, biasm, a1a, a1b, a2,
      g1_c, b1_c, g2_c, b2_c, selm, selmT, selo, seloT)

    # Boundary layout transform back to PyTorch NCHW.
    return jnp.transpose(out_lane.reshape(N, h2, w2, cout), (0, 3, 1, 2))


# ----------------------------------------------------------------------------
# Pure-JAX f32 reference (NCHW, PyTorch semantics) for verification
# ----------------------------------------------------------------------------
def _bn_relu_ref(x_nchw, gamma, beta):
    mean = jnp.mean(x_nchw, axis=(0, 2, 3), keepdims=True)
    var = jnp.mean((x_nchw - mean) ** 2, axis=(0, 2, 3), keepdims=True)
    y = (x_nchw - mean) * jax.lax.rsqrt(var + BN_EPS)
    return jnp.maximum(y * gamma[None, :, None, None] + beta[None, :, None, None], 0.0)


def _conv3x3_ref(x_nchw, w_oihw):
    return jax.lax.conv_general_dilated(
        x_nchw, w_oihw, window_strides=(1, 1), padding=((1, 1), (1, 1)),
        dimension_numbers=("NCHW", "OIHW", "NCHW"))


def decoder_block_reference(x1_nchw, x2_nchw, params):
    w_up, b_up = params["w_up"], params["b_up"]
    y = jnp.einsum("nchw,cokl->nohwkl", x1_nchw, w_up)
    N, Co, H, W = y.shape[:4]
    x1u = y.transpose(0, 1, 2, 4, 3, 5).reshape(N, Co, 2 * H, 2 * W)
    x1u = x1u + b_up[None, :, None, None]

    diff_h = x2_nchw.shape[2] - x1u.shape[2]
    diff_w = x2_nchw.shape[3] - x1u.shape[3]
    x1u = jnp.pad(x1u, ((0, 0), (0, 0),
                        (diff_h // 2, diff_h - diff_h // 2),
                        (diff_w // 2, diff_w - diff_w // 2)))
    x = jnp.concatenate([x2_nchw, x1u], axis=1)

    h = _bn_relu_ref(_conv3x3_ref(x, params["w1_oihw"]), params["g1"], params["beta1"])
    return _bn_relu_ref(_conv3x3_ref(h, params["w2_oihw"]), params["g2"], params["beta2"])


# ----------------------------------------------------------------------------
if __name__ == "__main__":
    # DecoderBlock(in_channels=8, out_channels=4, bilinear=False)
    in_channels, out_channels = 8, 4
    N, H1, W1 = 2, 8, 8          # x1: (N, in_channels, H1, W1)
    H2, W2 = 2 * H1, 2 * W1      # x2: (N, in_channels//2, H2, W2)

    key = jax.random.PRNGKey(0)
    ks = jax.random.split(key, 10)

    x1 = jax.random.normal(ks[0], (N, in_channels, H1, W1), jnp.float32)
    x2 = jax.random.normal(ks[1], (N, in_channels // 2, H2, W2), jnp.float32)

    # ConvBlock(in_channels, out_channels) -> mid_channels defaults to out_channels
    mid_channels = out_channels
    w_up = 0.1 * jax.random.normal(ks[2], (in_channels, in_channels // 2, 2, 2), jnp.float32)
    b_up = 0.1 * jax.random.normal(ks[3], (in_channels // 2,), jnp.float32)
    w1_oihw = 0.1 * jax.random.normal(ks[4], (mid_channels, in_channels, 3, 3), jnp.float32)
    g1 = 1.0 + 0.1 * jax.random.normal(ks[5], (mid_channels,), jnp.float32)
    beta1 = 0.1 * jax.random.normal(ks[6], (mid_channels,), jnp.float32)
    w2_oihw = 0.1 * jax.random.normal(ks[7], (out_channels, mid_channels, 3, 3), jnp.float32)
    g2 = 1.0 + 0.1 * jax.random.normal(ks[8], (out_channels,), jnp.float32)
    beta2 = 0.1 * jax.random.normal(ks[9], (out_channels,), jnp.float32)

    params = {
        "w_up": w_up, "b_up": b_up,
        "w1_oihw": w1_oihw, "g1": g1, "beta1": beta1,
        "w2_oihw": w2_oihw, "g2": g2, "beta2": beta2,
    }

    out = jax.block_until_ready(decoder_block_forward(x1, x2, params))
    ref = jax.block_until_ready(decoder_block_reference(x1, x2, params))

    # bf16 MXU operands (f32 accumulation) vs. a pure-f32 reference -> looser tolerance.
    np.testing.assert_allclose(np.asarray(out), np.asarray(ref), rtol=5e-2, atol=5e-2)
    assert out.shape == (N, out_channels, H2, W2)

    print("KERNEL_OK")
</pallas_src>

<mosaic_0001>
module attributes {stable_mosaic.version = 11 : i64} {
  func.func @decoder_block_kernel(%arg0: memref<2x16x64xbf16, #tpu.memory_space<vmem>>, %arg1: memref<2x16x64xbf16, #tpu.memory_space<vmem>>, %arg2: memref<2x64x64xbf16, #tpu.memory_space<vmem>>, %arg3: memref<1x16x64xf32, #tpu.memory_space<vmem>>, %arg4: memref<1x16x64xf32, #tpu.memory_space<vmem>>, %arg5: memref<1x16x64xf32, #tpu.memory_space<vmem>>, %arg6: memref<64x192xbf16, #tpu.memory_space<vmem>>, %arg7: memref<64x192xbf16, #tpu.memory_space<vmem>>, %arg8: memref<64x192xbf16, #tpu.memory_space<vmem>>, %arg9: memref<1x4xf32, #tpu.memory_space<vmem>>, %arg10: memref<1x4xf32, #tpu.memory_space<vmem>>, %arg11: memref<1x4xf32, #tpu.memory_space<vmem>>, %arg12: memref<1x4xf32, #tpu.memory_space<vmem>>, %arg13: memref<64x4xf32, #tpu.memory_space<vmem>>, %arg14: memref<4x64xf32, #tpu.memory_space<vmem>>, %arg15: memref<64x4xf32, #tpu.memory_space<vmem>>, %arg16: memref<4x64xf32, #tpu.memory_space<vmem>>, %arg17: memref<2x16x64xf32, #tpu.memory_space<vmem>>, %arg18: memref<2x16x64xf32, #tpu.memory_space<vmem>>) attributes {dimension_semantics = [], scalar_prefetch = 0 : i64, scratch_operands = 1 : i64, tpu.core_type = #tpu.core_type<tc>} {
    %c0 = arith.constant 0 : index
    %c0_0 = arith.constant 0 : index
    %c0_1 = arith.constant 0 : index
    %0 = vector.load %arg0[%c0, %c0_0, %c0_1] : memref<2x16x64xbf16, #tpu.memory_space<vmem>>, vector<2x16x64xbf16>
    %1 = vector.shape_cast %0 : vector<2x16x64xbf16> to vector<32x64xbf16>
    %c0_2 = arith.constant 0 : index
    %c0_3 = arith.constant 0 : index
    %c0_4 = arith.constant 0 : index
    %2 = vector.load %arg2[%c0_2, %c0_3, %c0_4] : memref<2x64x64xbf16, #tpu.memory_space<vmem>>, vector<1x64x64xbf16>
    %3 = vector.shape_cast %2 : vector<1x64x64xbf16> to vector<64x64xbf16>
    %cst = arith.constant dense<0.000000e+00> : vector<32x64xf32>
    %4 = tpu.matmul %1, %3, %cst {dimension_numbers = #tpu.dot_dimension_numbers<[1], [0], [0], [1], [0, 0, 1, 1], [], []>} : vector<32x64xbf16>, vector<64x64xbf16>, vector<32x64xf32> -> vector<32x64xf32>
    %5 = vector.shape_cast %4 : vector<32x64xf32> to vector<2x16x64xf32>
    %c1 = arith.constant 1 : index
    %c0_5 = arith.constant 0 : index
    %c0_6 = arith.constant 0 : index
    %6 = vector.load %arg2[%c1, %c0_5, %c0_6] : memref<2x64x64xbf16, #tpu.memory_space<vmem>>, vector<1x64x64xbf16>
    %7 = vector.shape_cast %6 : vector<1x64x64xbf16> to vector<64x64xbf16>
    %cst_7 = arith.constant dense<0.000000e+00> : vector<32x64xf32>
    %8 = tpu.matmul %1, %7, %cst_7 {dimension_numbers = #tpu.dot_dimension_numbers<[1], [0], [0], [1], [0, 0, 1, 1], [], []>} : vector<32x64xbf16>, vector<64x64xbf16>, vector<32x64xf32> -> vector<32x64xf32>
    %9 = vector.shape_cast %8 : vector<32x64xf32> to vector<2x16x64xf32>
    %c0_8 = arith.constant 0 : index
    %c0_9 = arith.constant 0 : index
    %c0_10 = arith.constant 0 : index
    %10 = vector.load %arg3[%c0_8, %c0_9, %c0_10] : memref<1x16x64xf32, #tpu.memory_space<vmem>>, vector<1x16x64xf32>
    %11 = vector.broadcast %10 : vector<1x16x64xf32> to vector<2x16x64xf32>
    %12 = arith.mulf %5, %11 : vector<2x16x64xf32>
    %c0_11 = arith.constant 0 : index
    %c0_12 = arith.constant 0 : index
    %c0_13 = arith.constant 0 : index
    %13 = vector.load %arg4[%c0_11, %c0_12, %c0_13] : memref<1x16x64xf32, #tpu.memory_space<vmem>>, vector<1x16x64xf32>
    %14 = vector.broadcast %13 : vector<1x16x64xf32> to vector<2x16x64xf32>
    %15 = arith.mulf %9, %14 : vector<2x16x64xf32>
    %16 = arith.addf %12, %15 : vector<2x16x64xf32>
    %c0_14 = arith.constant 0 : index
    %c0_15 = arith.constant 0 : index
    %c0_16 = arith.constant 0 : index
    %17 = vector.load %arg5[%c0_14, %c0_15, %c0_16] : memref<1x16x64xf32, #tpu.memory_space<vmem>>, vector<1x16x64xf32>
    %18 = vector.broadcast %17 : vector<1x16x64xf32> to vector<2x16x64xf32>
    %19 = arith.addf %16, %18 : vector<2x16x64xf32>
    %20 = arith.truncf %19 : vector<2x16x64xf32> to vector<2x16x64xbf16>
    %c0_17 = arith.constant 0 : index
    %c0_18 = arith.constant 0 : index
    %c0_19 = arith.constant 0 : index
    %21 = vector.load %arg1[%c0_17, %c0_18, %c0_19] : memref<2x16x64xbf16, #tpu.memory_space<vmem>>, vector<2x16x64xbf16>
    %22 = vector.shape_cast %21 : vector<2x16x64xbf16> to vector<32x64xbf16>
    %c0_20 = arith.constant 0 : index
    %c0_21 = arith.constant 0 : index
    %23 = vector.load %arg6[%c0_20, %c0_21] : memref<64x192xbf16, #tpu.memory_space<vmem>>, vector<64x192xbf16>
    %cst_22 = arith.constant dense<0.000000e+00> : vector<32x192xf32>
    %24 = tpu.matmul %22, %23, %cst_22 {dimension_numbers = #tpu.dot_dimension_numbers<[1], [0], [0], [1], [0, 0, 1, 1], [], []>} : vector<32x64xbf16>, vector<64x192xbf16>, vector<32x192xf32> -> vector<32x192xf32>
    %25 = vector.shape_cast %20 : vector<2x16x64xbf16> to vector<32x64xbf16>
    %c0_23 = arith.constant 0 : index
    %c0_24 = arith.constant 0 : index
    %26 = vector.load %arg7[%c0_23, %c0_24] : memref<64x192xbf16, #tpu.memory_space<vmem>>, vector<64x192xbf16>
    %cst_25 = arith.constant dense<0.000000e+00> : vector<32x192xf32>
    %27 = tpu.matmul %25, %26, %cst_25 {dimension_numbers = #tpu.dot_dimension_numbers<[1], [0], [0], [1], [0, 0, 1, 1], [], []>} : vector<32x64xbf16>, vector<64x192xbf16>, vector<32x192xf32> -> vector<32x192xf32>
    %28 = arith.addf %24, %27 : vector<32x192xf32>
    %29 = vector.shape_cast %28 : vector<32x192xf32> to vector<2x16x192xf32>
    %30 = vector.extract_strided_slice %29 {offsets = [0, 0, 64], sizes = [2, 16, 64], strides = [1, 1, 1]} : vector<2x16x192xf32> to vector<2x16x64xf32>
    %c0_26 = arith.constant 0 : index
    %c0_27 = arith.constant 0 : index
    %c0_28 = arith.constant 0 : index
    %31 = vector.load %arg18[%c0_26, %c0_27, %c0_28] : memref<2x16x64xf32, #tpu.memory_space<vmem>>, vector<2x16x64xf32>
    tpu.vector_store %arg18[%c0_26, %c0_27, %c0_28], %30 {strides = array<i32>} : memref<2x16x64xf32, #tpu.memory_space<vmem>>, vector<2x16x64xf32>,
    %c0_29 = arith.constant 0 : index
    %c1_30 = arith.constant 1 : index
    %c0_31 = arith.constant 0 : index
    %32 = vector.load %arg18[%c0_29, %c1_30, %c0_31] : memref<2x16x64xf32, #tpu.memory_space<vmem>>, vector<2x15x64xf32>
    %33 = vector.extract_strided_slice %29 {offsets = [0, 0, 0], sizes = [2, 15, 64], strides = [1, 1, 1]} : vector<2x16x192xf32> to vector<2x15x64xf32>
    %34 = arith.addf %32, %33 : vector<2x15x64xf32>
    %c0_32 = arith.constant 0 : index
    %c1_33 = arith.constant 1 : index
    %c0_34 = arith.constant 0 : index
    %35 = vector.load %arg18[%c0_32, %c1_33, %c0_34] : memref<2x16x64xf32, #tpu.memory_space<vmem>>, vector<2x15x64xf32>
    tpu.vector_store %arg18[%c0_32, %c1_33, %c0_34], %34 {strides = array<i32>} : memref<2x16x64xf32, #tpu.memory_space<vmem>>, vector<2x15x64xf32>,
    %c0_35 = arith.constant 0 : index
    %c0_36 = arith.constant 0 : index
    %c0_37 = arith.constant 0 : index
    %36 = vector.load %arg18[%c0_35, %c0_36, %c0_37] : memref<2x16x64xf32, #tpu.memory_space<vmem>>, vector<2x15x64xf32>
    %37 = vector.extract_strided_slice %29 {offsets = [0, 1, 128], sizes = [2, 15, 64], strides = [1, 1, 1]} : vector<2x16x192xf32> to vector<2x15x64xf32>
    %38 = arith.addf %36, %37 : vector<2x15x64xf32>
    %c0_38 = arith.constant 0 : index
    %c0_39 = arith.constant 0 : index
    %c0_40 = arith.constant 0 : index
    %39 = vector.load %arg18[%c0_38, %c0_39, %c0_40] : memref<2x16x64xf32, #tpu.memory_space<vmem>>, vector<2x15x64xf32>
    tpu.vector_store %arg18[%c0_38, %c0_39, %c0_40], %38 {strides = array<i32>} : memref<2x16x64xf32, #tpu.memory_space<vmem>>, vector<2x15x64xf32>,
    %c0_41 = arith.constant 0 : index
    %c0_42 = arith.constant 0 : index
    %c0_43 = arith.constant 0 : index
    %40 = vector.load %arg18[%c0_41, %c0_42, %c0_43] : memref<2x16x64xf32, #tpu.memory_space<vmem>>, vector<2x16x64xf32>
    %41 = vector.shape_cast %40 : vector<2x16x64xf32> to vector<32x64xf32>
    %cst_44 = arith.constant dense<0.000000e+00> : vector<64xf32>
    %42 = vector.multi_reduction <add>, %41, %cst_44 [0] : vector<32x64xf32> to vector<64xf32>
    %43 = vector.shape_cast %42 : vector<64xf32> to vector<1x64xf32>
    %44 = arith.mulf %41, %41 : vector<32x64xf32>
    %cst_45 = arith.constant dense<0.000000e+00> : vector<64xf32>
    %45 = vector.multi_reduction <add>, %44, %cst_45 [0] : vector<32x64xf32> to vector<64xf32>
    %46 = vector.shape_cast %45 : vector<64xf32> to vector<1x64xf32>
    %c0_46 = arith.constant 0 : index
    %c0_47 = arith.constant 0 : index
    %47 = vector.load %arg13[%c0_46, %c0_47] : memref<64x4xf32, #tpu.memory_space<vmem>>, vector<64x4xf32>
    %cst_48 = arith.constant dense<0.000000e+00> : vector<1x4xf32>
    %48 = tpu.matmul %43, %47, %cst_48 {dimension_numbers = #tpu.dot_dimension_numbers<[1], [0], [0], [1], [0, 0, 1, 1], [], []>} : vector<1x64xf32>, vector<64x4xf32>, vector<1x4xf32> -> vector<1x4xf32>
    %cst_49 = arith.constant 0.001953125 : f32
    %49 = vector.broadcast %cst_49 : f32 to vector<1x4xf32>
    %50 = arith.mulf %48, %49 : vector<1x4xf32>
    %c0_50 = arith.constant 0 : index
    %c0_51 = arith.constant 0 : index
    %51 = vector.load %arg13[%c0_50, %c0_51] : memref<64x4xf32, #tpu.memory_space<vmem>>, vector<64x4xf32>
    %cst_52 = arith.constant dense<0.000000e+00> : vector<1x4xf32>
    %52 = tpu.matmul %46, %51, %cst_52 {dimension_numbers = #tpu.dot_dimension_numbers<[1], [0], [0], [1], [0, 0, 1, 1], [], []>} : vector<1x64xf32>, vector<64x4xf32>, vector<1x4xf32> -> vector<1x4xf32>
    %cst_53 = arith.constant 0.001953125 : f32
    %53 = vector.broadcast %cst_53 : f32 to vector<1x4xf32>
    %54 = arith.mulf %52, %53 : vector<1x4xf32>
    %55 = arith.mulf %50, %50 : vector<1x4xf32>
    %56 = arith.subf %54, %55 : vector<1x4xf32>
    %cst_54 = arith.constant 0.000000e+00 : f32
    %57 = vector.broadcast %cst_54 : f32 to vector<1x4xf32>
    %58 = arith.maximumf %56, %57 : vector<1x4xf32>
    %cst_55 = arith.constant 9.99999974E-6 : f32
    %59 = vector.broadcast %cst_55 : f32 to vector<1x4xf32>
    %60 = arith.addf %58, %59 : vector<1x4xf32>
    %61 = math.rsqrt %60 : vector<1x4xf32>
    %c0_56 = arith.constant 0 : index
    %c0_57 = arith.constant 0 : index
    %62 = vector.load %arg9[%c0_56, %c0_57] : memref<1x4xf32, #tpu.memory_space<vmem>>, vector<1x4xf32>
    %63 = arith.mulf %61, %62 : vector<1x4xf32>
    %c0_58 = arith.constant 0 : index
    %c0_59 = arith.constant 0 : index
    %64 = vector.load %arg10[%c0_58, %c0_59] : memref<1x4xf32, #tpu.memory_space<vmem>>, vector<1x4xf32>
    %65 = arith.mulf %50, %63 : vector<1x4xf32>
    %66 = arith.subf %64, %65 : vector<1x4xf32>
    %c0_60 = arith.constant 0 : index
    %c0_61 = arith.constant 0 : index
    %67 = vector.load %arg14[%c0_60, %c0_61] : memref<4x64xf32, #tpu.memory_space<vmem>>, vector<4x64xf32>
    %cst_62 = arith.constant dense<0.000000e+00> : vector<1x64xf32>
    %68 = tpu.matmul %63, %67, %cst_62 {dimension_numbers = #tpu.dot_dimension_numbers<[1], [0], [0], [1], [0, 0, 1, 1], [], []>} : vector<1x4xf32>, vector<4x64xf32>, vector<1x64xf32> -> vector<1x64xf32>
    %c0_63 = arith.constant 0 : index
    %c0_64 = arith.constant 0 : index
    %69 = vector.load %arg14[%c0_63, %c0_64] : memref<4x64xf32, #tpu.memory_space<vmem>>, vector<4x64xf32>
    %cst_65 = arith.constant dense<0.000000e+00> : vector<1x64xf32>
    %70 = tpu.matmul %66, %69, %cst_65 {dimension_numbers = #tpu.dot_dimension_numbers<[1], [0], [0], [1], [0, 0, 1, 1], [], []>} : vector<1x4xf32>, vector<4x64xf32>, vector<1x64xf32> -> vector<1x64xf32>
    %71 = vector.broadcast %68 : vector<1x64xf32> to vector<32x64xf32>
    %72 = arith.mulf %41, %71 : vector<32x64xf32>
    %73 = vector.broadcast %70 : vector<1x64xf32> to vector<32x64xf32>
    %74 = arith.addf %72, %73 : vector<32x64xf32>
    %cst_66 = arith.constant 0.000000e+00 : f32
    %75 = vector.broadcast %cst_66 : f32 to vector<32x64xf32>
    %76 = arith.maximumf %74, %75 : vector<32x64xf32>
    %77 = arith.truncf %76 : vector<32x64xf32> to vector<32x64xbf16>
    %c0_67 = arith.constant 0 : index
    %c0_68 = arith.constant 0 : index
    %78 = vector.load %arg8[%c0_67, %c0_68] : memref<64x192xbf16, #tpu.memory_space<vmem>>, vector<64x192xbf16>
    %cst_69 = arith.constant dense<0.000000e+00> : vector<32x192xf32>
    %79 = tpu.matmul %77, %78, %cst_69 {dimension_numbers = #tpu.dot_dimension_numbers<[1], [0], [0], [1], [0, 0, 1, 1], [], []>} : vector<32x64xbf16>, vector<64x192xbf16>, vector<32x192xf32> -> vector<32x192xf32>
    %80 = vector.shape_cast %79 : vector<32x192xf32> to vector<2x16x192xf32>
    %81 = vector.extract_strided_slice %80 {offsets = [0, 0, 64], sizes = [2, 16, 64], strides = [1, 1, 1]} : vector<2x16x192xf32> to vector<2x16x64xf32>
    %c0_70 = arith.constant 0 : index
    %c0_71 = arith.constant 0 : index
    %c0_72 = arith.constant 0 : index
    %82 = vector.load %arg17[%c0_70, %c0_71, %c0_72] : memref<2x16x64xf32, #tpu.memory_space<vmem>>, vector<2x16x64xf32>
    tpu.vector_store %arg17[%c0_70, %c0_71, %c0_72], %81 {strides = array<i32>} : memref<2x16x64xf32, #tpu.memory_space<vmem>>, vector<2x16x64xf32>,
    %c0_73 = arith.constant 0 : index
    %c1_74 = arith.constant 1 : index
    %c0_75 = arith.constant 0 : index
    %83 = vector.load %arg17[%c0_73, %c1_74, %c0_75] : memref<2x16x64xf32, #tpu.memory_space<vmem>>, vector<2x15x64xf32>
    %84 = vector.extract_strided_slice %80 {offsets = [0, 0, 0], sizes = [2, 15, 64], strides = [1, 1, 1]} : vector<2x16x192xf32> to vector<2x15x64xf32>
    %85 = arith.addf %83, %84 : vector<2x15x64xf32>
    %c0_76 = arith.constant 0 : index
    %c1_77 = arith.constant 1 : index
    %c0_78 = arith.constant 0 : index
    %86 = vector.load %arg17[%c0_76, %c1_77, %c0_78] : memref<2x16x64xf32, #tpu.memory_space<vmem>>, vector<2x15x64xf32>
    tpu.vector_store %arg17[%c0_76, %c1_77, %c0_78], %85 {strides = array<i32>} : memref<2x16x64xf32, #tpu.memory_space<vmem>>, vector<2x15x64xf32>,
    %c0_79 = arith.constant 0 : index
    %c0_80 = arith.constant 0 : index
    %c0_81 = arith.constant 0 : index
    %87 = vector.load %arg17[%c0_79, %c0_80, %c0_81] : memref<2x16x64xf32, #tpu.memory_space<vmem>>, vector<2x15x64xf32>
    %88 = vector.extract_strided_slice %80 {offsets = [0, 1, 128], sizes = [2, 15, 64], strides = [1, 1, 1]} : vector<2x16x192xf32> to vector<2x15x64xf32>
    %89 = arith.addf %87, %88 : vector<2x15x64xf32>
    %c0_82 = arith.constant 0 : index
    %c0_83 = arith.constant 0 : index
    %c0_84 = arith.constant 0 : index
    %90 = vector.load %arg17[%c0_82, %c0_83, %c0_84] : memref<2x16x64xf32, #tpu.memory_space<vmem>>, vector<2x15x64xf32>
    tpu.vector_store %arg17[%c0_82, %c0_83, %c0_84], %89 {strides = array<i32>} : memref<2x16x64xf32, #tpu.memory_space<vmem>>, vector<2x15x64xf32>,
    %c0_85 = arith.constant 0 : index
    %c0_86 = arith.constant 0 : index
    %c0_87 = arith.constant 0 : index
    %91 = vector.load %arg17[%c0_85, %c0_86, %c0_87] : memref<2x16x64xf32, #tpu.memory_space<vmem>>, vector<2x16x64xf32>
    %92 = vector.shape_cast %91 : vector<2x16x64xf32> to vector<32x64xf32>
    %cst_88 = arith.constant dense<0.000000e+00> : vector<64xf32>
    %93 = vector.multi_reduction <add>, %92, %cst_88 [0] : vector<32x64xf32> to vector<64xf32>
    %94 = vector.shape_cast %93 : vector<64xf32> to vector<1x64xf32>
    %95 = arith.mulf %92, %92 : vector<32x64xf32>
    %cst_89 = arith.constant dense<0.000000e+00> : vector<64xf32>
    %96 = vector.multi_reduction <add>, %95, %cst_89 [0] : vector<32x64xf32> to vector<64xf32>
    %97 = vector.shape_cast %96 : vector<64xf32> to vector<1x64xf32>
    %c0_90 = arith.constant 0 : index
    %c0_91 = arith.constant 0 : index
    %98 = vector.load %arg15[%c0_90, %c0_91] : memref<64x4xf32, #tpu.memory_space<vmem>>, vector<64x4xf32>
    %cst_92 = arith.constant dense<0.000000e+00> : vector<1x4xf32>
    %99 = tpu.matmul %94, %98, %cst_92 {dimension_numbers = #tpu.dot_dimension_numbers<[1], [0], [0], [1], [0, 0, 1, 1], [], []>} : vector<1x64xf32>, vector<64x4xf32>, vector<1x4xf32> -> vector<1x4xf32>
    %cst_93 = arith.constant 0.001953125 : f32
    %100 = vector.broadcast %cst_93 : f32 to vector<1x4xf32>
    %101 = arith.mulf %99, %100 : vector<1x4xf32>
    %c0_94 = arith.constant 0 : index
    %c0_95 = arith.constant 0 : index
    %102 = vector.load %arg15[%c0_94, %c0_95] : memref<64x4xf32, #tpu.memory_space<vmem>>, vector<64x4xf32>
    %cst_96 = arith.constant dense<0.000000e+00> : vector<1x4xf32>
    %103 = tpu.matmul %97, %102, %cst_96 {dimension_numbers = #tpu.dot_dimension_numbers<[1], [0], [0], [1], [0, 0, 1, 1], [], []>} : vector<1x64xf32>, vector<64x4xf32>, vector<1x4xf32> -> vector<1x4xf32>
    %cst_97 = arith.constant 0.001953125 : f32
    %104 = vector.broadcast %cst_97 : f32 to vector<1x4xf32>
    %105 = arith.mulf %103, %104 : vector<1x4xf32>
    %106 = arith.mulf %101, %101 : vector<1x4xf32>
    %107 = arith.subf %105, %106 : vector<1x4xf32>
    %cst_98 = arith.constant 0.000000e+00 : f32
    %108 = vector.broadcast %cst_98 : f32 to vector<1x4xf32>
    %109 = arith.maximumf %107, %108 : vector<1x4xf32>
    %cst_99 = arith.constant 9.99999974E-6 : f32
    %110 = vector.broadcast %cst_99 : f32 to vector<1x4xf32>
    %111 = arith.addf %109, %110 : vector<1x4xf32>
    %112 = math.rsqrt %111 : vector<1x4xf32>
    %c0_100 = arith.constant 0 : index
    %c0_101 = arith.constant 0 : index
    %113 = vector.load %arg11[%c0_100, %c0_101] : memref<1x4xf32, #tpu.memory_space<vmem>>, vector<1x4xf32>
    %114 = arith.mulf %112, %113 : vector<1x4xf32>
    %c0_102 = arith.constant 0 : index
    %c0_103 = arith.constant 0 : index
    %115 = vector.load %arg12[%c0_102, %c0_103] : memref<1x4xf32, #tpu.memory_space<vmem>>, vector<1x4xf32>
    %116 = arith.mulf %101, %114 : vector<1x4xf32>
    %117 = arith.subf %115, %116 : vector<1x4xf32>
    %c0_104 = arith.constant 0 : index
    %c0_105 = arith.constant 0 : index
    %118 = vector.load %arg16[%c0_104, %c0_105] : memref<4x64xf32, #tpu.memory_space<vmem>>, vector<4x64xf32>
    %cst_106 = arith.constant dense<0.000000e+00> : vector<1x64xf32>
    %119 = tpu.matmul %114, %118, %cst_106 {dimension_numbers = #tpu.dot_dimension_numbers<[1], [0], [0], [1], [0, 0, 1, 1], [], []>} : vector<1x4xf32>, vector<4x64xf32>, vector<1x64xf32> -> vector<1x64xf32>
    %c0_107 = arith.constant 0 : index
    %c0_108 = arith.constant 0 : index
    %120 = vector.load %arg16[%c0_107, %c0_108] : memref<4x64xf32, #tpu.memory_space<vmem>>, vector<4x64xf32>
    %cst_109 = arith.constant dense<0.000000e+00> : vector<1x64xf32>
    %121 = tpu.matmul %117, %120, %cst_109 {dimension_numbers = #tpu.dot_dimension_numbers<[1], [0], [0], [1], [0, 0, 1, 1], [], []>} : vector<1x4xf32>, vector<4x64xf32>, vector<1x64xf32> -> vector<1x64xf32>
    %122 = vector.broadcast %119 : vector<1x64xf32> to vector<32x64xf32>
    %123 = arith.mulf %92, %122 : vector<32x64xf32>
    %124 = vector.broadcast %121 : vector<1x64xf32> to vector<32x64xf32>
    %125 = arith.addf %123, %124 : vector<32x64xf32>
    %cst_110 = arith.constant 0.000000e+00 : f32
    %126 = vector.broadcast %cst_110 : f32 to vector<32x64xf32>
    %127 = arith.maximumf %125, %126 : vector<32x64xf32>
    %128 = vector.shape_cast %127 : vector<32x64xf32> to vector<2x16x64xf32>
    %c0_111 = arith.constant 0 : index
    %c0_112 = arith.constant 0 : index
    %c0_113 = arith.constant 0 : index
    %129 = vector.load %arg17[%c0_111, %c0_112, %c0_113] : memref<2x16x64xf32, #tpu.memory_space<vmem>>, vector<2x16x64xf32>
    tpu.vector_store %arg17[%c0_111, %c0_112, %c0_113], %128 {strides = array<i32>} : memref<2x16x64xf32, #tpu.memory_space<vmem>>, vector<2x16x64xf32>,
    return
  }
}

</mosaic_0001>

<bundles_post_ra>
// kernel: tile.8
= control target key start
LH: loop header
LB: loop body
LE: loop exit
PB: predicated region body
PF: predicated region fallthrough
CT: control target
= control target key end

     0   :  { %s28_s0 = inlined_call_operand.vmem [shape: f32[4], index: 0, kind: input, shape index: {}]   ;;  %s29_s1 = inlined_call_operand.vmem [shape: f32[16,4], index: 1, kind: output, shape index: {}]  }
   0x1   :  { %v4_v0 = vld [vmem:[%s28_s0] ss:$0 sm:$0xff] }
   0x2   :  { %5 = vst [vmem:[%s29_s1] sm:$0xff] %v4_v0  ;;  %8 = vst [vmem:[%s29_s1 + $0x8] sm:$0xff] %v4_v0 }

// kernel: mul.37
= control target key start
LH: loop header
LB: loop body
LE: loop exit
PB: predicated region body
PF: predicated region fallthrough
CT: control target
= control target key end

     0   :  { %s28_s0 = inlined_call_operand.vmem [shape: f32[64], index: 0, kind: input, shape index: {}]   ;;  %s29_s1 = inlined_call_operand.vmem [shape: f32[1,16,64], index: 1, kind: output, shape index: {}]  }
   0x1   :  { %v4_v0 = vld [vmem:[%s28_s0] ss:$0 sm:$0xff] }
   0x2   :  { %5 = vst [vmem:[%s29_s1] sm:$0xff] %v4_v0  ;;  %8 = vst [vmem:[%s29_s1 + $0x8] sm:$0xff] %v4_v0 }

// kernel: decoder_block_forward.1
= control target key start
LH: loop header
LB: loop body
LE: loop exit
PB: predicated region body
PF: predicated region fallthrough
CT: control target
= control target key end

     0   :  { %vm103_vm0 = vcmask 523264   ;;  %v1825_v18 = vmov 0   ;;  %vm534_vm1 = vcmask 1046528   ;;  %vm1828_vm2 = vmmov 0   ;;  %s2383_s2 = inlined_call_operand.vmem [shape: bf16[2,64,64], index: 2, kind: input, shape index: {}]   ;;  %s2384_s0 = inlined_call_operand.vmem [shape: bf16[2,16,64], index: 0, kind: input, shape index: {}]   ;;  %s2385_s7 = inlined_call_operand.vmem [shape: bf16[64,192], index: 7, kind: input, shape index: {}]   ;;  %s2386_s6 = inlined_call_operand.vmem [shape: bf16[64,192], index: 6, kind: input, shape index: {}]   ;;  %s2387_s1 = inlined_call_operand.vmem [shape: bf16[2,16,64], index: 1, kind: input, shape index: {}]   ;;  %s2388_s3 = inlined_call_operand.vmem [shape: f32[1,16,64], index: 3, kind: input, shape index: {}]   ;;  %s2389_s4 = inlined_call_operand.vmem [shape: f32[1,16,64], index: 4, kind: input, shape index: {}]   ;;  %s2390_s5 = inlined_call_operand.vmem [shape: f32[1,16,64], index: 5, kind: input, shape index: {}]   ;;  %s2391_s13 = inlined_call_operand.vmem [shape: f32[64,4], index: 13, kind: input, shape index: {}, may-alias: {13,15}]   ;;  %s2392_s14 = inlined_call_operand.vmem [shape: f32[4,64], index: 14, kind: input, shape index: {}, may-alias: {14,16}]   ;;  %s2393_s8 = inlined_call_operand.vmem [shape: bf16[64,192], index: 8, kind: input, shape index: {}]   ;;  %s2394_s9 = inlined_call_operand.vmem [shape: f32[1,4], index: 9, kind: input, shape index: {}]   ;;  %s2395_s10 = inlined_call_operand.vmem [shape: f32[1,4], index: 10, kind: input, shape index: {}]   ;;  %s2396_s15 = inlined_call_operand.vmem [shape: f32[64,4], index: 15, kind: input, shape index: {}, may-alias: {13,15}]   ;;  %s2397_s17 = inlined_call_operand.vmem [shape: f32[2,16,64], index: 17, kind: output, shape index: {}]   ;;  %s2398_s16 = inlined_call_operand.vmem [shape: f32[4,64], index: 16, kind: input, shape index: {}, may-alias: {14,16}]   ;;  %s2399_s11 = inlined_call_operand.vmem [shape: f32[1,4], index: 11, kind: input, shape index: {}]   ;;  %s2400_s12 = inlined_call_operand.vmem [shape: f32[1,4], index: 12, kind: input, shape index: {}]  }
   0x1   :  { %2403 = sst [smem:[#allocation3_spill]] %s2383_s2  ;;  %v1785_v9 = vld [vmem:[%s2385_s7 + $0x4] ss:$8 sps:$4 sm:$0xff]   ;;  %v1783_v11 = vld [vmem:[%s2385_s7] ss:$8 sps:$4 sm:$0xff]   ;;  %vm522_vm3 = vcmask 522240  }
   0x2   :  { %2404 = sst [smem:[#allocation4_spill]] %s2384_s0  ;;  %s2405_s26 = sld [smem:[#allocation3_spill]]  ;;  %v1788_v12 = vld [vmem:[%s2385_s7 + $0x14] ss:$8 sps:$4 sm:$0xff]   ;;  %v1786_v13 = vld [vmem:[%s2385_s7 + $0x10] ss:$8 sps:$4 sm:$0xff]  }
   0x3   :  { %s2406_s27 = sld [smem:[#allocation4_spill]]  ;;  %v1791_v14 = vld [vmem:[%s2385_s7 + $0x24] ss:$8 sps:$4 sm:$0xff]   ;;  %v1789_v15 = vld [vmem:[%s2385_s7 + $0x20] ss:$8 sps:$4 sm:$0xff]   ;;  %vm758_vm4 = vcmask 1043456  }
   0x4   :  { %v1794_v16 = vld [vmem:[%s2385_s7 + $0x34] ss:$8 sps:$4 sm:$0xff]   ;;  %v1792_v17 = vld [vmem:[%s2385_s7 + $0x30] ss:$8 sps:$4 sm:$0xff]   ;;  %v1797_v19 = vld [vmem:[%s2386_s6 + $0x4] ss:$8 sps:$4 sm:$0xff]  }
   0x5   :  { %v241_v20 = vld [vmem:[%s2388_s3] sm:$0xff]  ;;  %v242_v23 = vld [vmem:[%s2388_s3 + $0x8] sm:$0xff]  ;;  %v1800_v53 = vld [vmem:[%s2386_s6 + $0x14] ss:$8 sps:$4 sm:$0xff]   ;;  %vm754_vm5 = vcmask 31744  }
   0x6   :  { %v247_v21 = vld [vmem:[%s2389_s4] sm:$0xff]  ;;  %v248_v27 = vld [vmem:[%s2389_s4 + $0x8] sm:$0xff]  ;;  %v1798_v54 = vld [vmem:[%s2386_s6 + $0x10] ss:$8 sps:$4 sm:$0xff]  }
   0x7   :  { %v257_v40 = vld [vmem:[%s2390_s5] sm:$0xff]  ;;  %v258_v42 = vld [vmem:[%s2390_s5 + $0x8] sm:$0xff]  ;;  %v1806_v57 = vld [vmem:[%s2386_s6 + $0x34] ss:$8 sps:$4 sm:$0xff]  }
   0x8   :  { %v1773_v0 = vld [vmem:[%s2405_s26] sm:$0xff]   ;;  %v1775_v2 = vld [vmem:[%s2405_s26 + $0x8] sm:$0xff]   ;;  %v1777_v4 = vld [vmem:[%s2405_s26 + $0x10] sm:$0xff]  }
   0x9   :  { %v1774_v1 = vld [vmem:[%s2405_s26 + $0x20] sm:$0xff]   ;;  %1592 = vmatprep.subr.bf16.mxu0 %v1773_v0  ;;  %v1776_v3 = vld [vmem:[%s2405_s26 + $0x28] sm:$0xff]   ;;  %v1778_v5 = vld [vmem:[%s2405_s26 + $0x30] sm:$0xff]  }
   0xa   :  { %1604 = vmatprep.subr.bf16.mxu1 %v1774_v1  ;;  %1593 = vmatpush3.bf16.msra.mxu0 %v1773_v0  ;;  %v1779_v6 = vld [vmem:[%s2405_s26 + $0x18] sm:$0xff]   ;;  %v1781_v7 = vld [vmem:[%s2406_s27] sm:$0xff]   ;;  %v1782_v10 = vld [vmem:[%s2406_s27 + $0x8] sm:$0xff]  }
   0xb   :  { %1605 = vmatpush3.bf16.msra.mxu1 %v1774_v1  ;;  %1594 = vmatprep.subr.bf16.mxu0 %v1775_v2  ;;  %v1780_v8 = vld [vmem:[%s2405_s26 + $0x38] sm:$0xff]   ;;  %v1795_v51 = vld [vmem:[%s2386_s6] ss:$8 sps:$4 sm:$0xff]   ;;  %v1803_v55 = vld [vmem:[%s2386_s6 + $0x24] ss:$8 sps:$4 sm:$0xff]  }
   0xc   :  { %1606 = vmatprep.subr.bf16.mxu1 %v1776_v3  ;;  %1600 = vmatprep.mubr.msk.bf16.mxu0 %vm103_vm0, %v1781_v7  ;;  %v1801_v56 = vld [vmem:[%s2386_s6 + $0x20] ss:$8 sps:$4 sm:$0xff]   ;;  %v1804_v58 = vld [vmem:[%s2386_s6 + $0x30] ss:$8 sps:$4 sm:$0xff]   ;;  %s1826_s6 = smov 64  }
   0xd   :  { %1612 = vmatprep.mubr.msk.bf16.mxu1 %vm103_vm0, %v1781_v7  ;;  %v1807_v59 = vld [vmem:[%s2387_s1] sm:$0xff]   ;;  %v1808_v60 = vld [vmem:[%s2387_s1 + $0x8] sm:$0xff]  }
   0xe   :  { %1595 = vmatpush3.bf16.msra.mxu0 %v1775_v2 }
   0xf   :  { %1607 = vmatpush3.bf16.msra.mxu1 %v1776_v3  ;;  %1596 = vmatprep.subr.bf16.mxu0 %v1777_v4 }
  0x10   :  { %1608 = vmatprep.subr.bf16.mxu1 %v1778_v5 }
  0x12   :  { %1597 = vmatpush3.bf16.msra.mxu0 %v1777_v4 }
  0x13   :  { %1609 = vmatpush3.bf16.msra.mxu1 %v1778_v5  ;;  %1598 = vmatprep.subr.bf16.mxu0 %v1779_v6 }
  0x14   :  { %1610 = vmatprep.subr.bf16.mxu1 %v1780_v8 }
  0x16   :  { %1599 = vmatpush3.bf16.msra.mxu0 %v1779_v6 }
  0x17   :  { %1611 = vmatpush3.bf16.msra.mxu1 %v1780_v8  ;;  %331 = vmatprep.subr.bf16.mxu0 %v1785_v9 }
  0x19   :  { %1601 = vmatmul.mubr.msk.bf16.vlgmr.msra.gmra.mrb[0].mxu0 %vm103_vm0, %v1782_v10 }
  0x1a   :  { %1613 = vmatmul.mubr.msk.bf16.vlgmr.msra.gmra.mrb[0].mxu1 %vm103_vm0, %v1782_v10  ;;  %332 = vmatpush1.bf16.msra.mxu0 %v1783_v11  ;;  %v1827_v11 = vmov 0.0|0.0  }
  0x1b   :  { %333 = vmatprep.subr.bf16.mxu0 %v1788_v12  ;;  %363 = vmatprep.mubr.bf16.mxu0 %v1825_v18  ;;  %v587_v12 = vld [vmem:[%s2391_s13] sm:$0xff] }
  0x1c   :  { %1712 = vmatprep.subr.bf16.mxu1 %v1827_v11 }
  0x1e   :  { %334 = vmatpush1.bf16.msra.mxu0 %v1786_v13  ;;  %v588_v13 = vld [vmem:[%s2391_s13 + $0x8] sm:$0xff] }
  0x1f   :  { %335 = vmatprep.subr.bf16.mxu0 %v1791_v14  ;;  %v589_v14 = vld [vmem:[%s2391_s13 + $0x10] sm:$0xff] }
  0x22   :  { %336 = vmatpush1.bf16.msra.mxu0 %v1789_v15  ;;  %v1829_v15 = vmov 0.0  }
  0x23   :  { %337 = vmatprep.subr.bf16.mxu0 %v1794_v16  ;;  %1632 = vmatprep.mubr.msk.f32.mxu1 %vm1828_vm2, %v1829_v15  ;;  %v2056_v16 = vpack.c.bf16 %v588_v13, %v587_v12 }
  0x25   :  { %1714 = vmatpush3.bf16.msra.mxu1 %v2056_v16 }
  0x26   :  { %338 = vmatpush1.bf16.msra.mxu0 %v1792_v17  ;;  %v590_v17 = vld [vmem:[%s2391_s13 + $0x18] sm:$0xff]  ;;  %1715 = vmatprep.subr.bf16.mxu1 %v1827_v11 }
  0x27   :  { %440 = vmatprep.subr.bf16.mxu0 %v1797_v19  ;;  %v2062_v19 = vpack.c.bf16 %v590_v17, %v589_v14 }
  0x29   :  { %1717 = vmatpush3.bf16.msra.mxu1 %v2062_v19 }
  0x2a   :  { %1718 = vmatprep.subr.bf16.mxu1 %v1827_v11 }
  0xec   :  { %v1602_v22 = vpop.f32.mrb[0].mxu0 }
  0xed   :  { %v245_v24 = vmul.f32 %v1602_v22, %v241_v20  ;;  %v1614_v25 = vpop.f32.mrb[0].mxu1  ;;  %v144_v26 = vpop.f32.mrb[1].mxu0 }
  0xee   :  { %v251_v28 = vmul.f32 %v1614_v25, %v247_v21  ;;  %v243_v29 = vmul.f32 %v241_v20, %v144_v26  ;;  %v226_v30 = vpop.f32.mrb[1].mxu1  ;;  %v1603_v31 = vpop.f32.mrb[2].mxu0  ;;  %v591_v20 = vld [vmem:[%s2391_s13 + $0x20] sm:$0xff] }
  0xef   :  { %v249_v32 = vmul.f32 %v247_v21, %v226_v30  ;;  %v246_v33 = vmul.f32 %v1603_v31, %v242_v23  ;;  %v1615_v34 = vpop.f32.mrb[2].mxu1  ;;  %v147_v35 = vpop.f32.mrb[3].mxu0  ;;  %v592_v21 = vld [vmem:[%s2391_s13 + $0x28] sm:$0xff] }
  0xf0   :  { %v255_v36 = vadd.f32 %v251_v28, %v245_v24  ;;  %v252_v37 = vmul.f32 %v1615_v34, %v248_v27  ;;  %v244_v38 = vmul.f32 %v242_v23, %v147_v35  ;;  %v229_v39 = vpop.f32.mrb[3].mxu1  ;;  %v2072_v22 = vpack.c.bf16 %v592_v21, %v591_v20  ;;  %v593_v23 = vld [vmem:[%s2391_s13 + $0x30] sm:$0xff]  ;;  %v594_v24 = vld [vmem:[%s2391_s13 + $0x38] sm:$0xff]  ;;  %v1811_v21 = vld [vmem:[%s2393_s8 + $0x4] ss:$8 sps:$4 sm:$0xff]  }
  0xf1   :  { %v253_v41 = vadd.f32 %v249_v32, %v243_v29  ;;  %v250_v43 = vmul.f32 %v248_v27, %v229_v39  ;;  %v2082_v25 = vpack.c.bf16 %v594_v24, %v593_v23 }
  0xf2   :  { %v256_v44 = vadd.f32 %v252_v37, %v246_v33  ;;  %v261_v46 = vadd.f32 %v257_v40, %v255_v36  ;;  %1720 = vmatpush3.bf16.msra.mxu1 %v2072_v22 }
  0xf3   :  { %v254_v45 = vadd.f32 %v250_v43, %v244_v38  ;;  %v259_v48 = vadd.f32 %v257_v40, %v253_v41  ;;  %1721 = vmatprep.subr.bf16.mxu1 %v1827_v11 }
  0xf4   :  { %v262_v47 = vadd.f32 %v258_v42, %v256_v44 }
  0xf5   :  { %v260_v49 = vadd.f32 %v258_v42, %v254_v45 }
  0xf6   :  { %v264_v50 = vpack.c.bf16 %v262_v47, %v261_v46  ;;  %1723 = vmatpush3.bf16.msra.mxu1 %v2082_v25 }
  0xf7   :  { %v263_v52 = vpack.c.bf16 %v260_v49, %v259_v48  ;;  %1724 = vmatprep.subr.bf16.mxu1 %v1827_v11 }
  0xf9   :  { %1500 = vmatmul.mubr.msk.bf16.vlgmr.msra.gmra.mrb[4].mxu0 %vm103_vm0, %v263_v52 }
  0xfa   :  { %441 = vmatpush1.bf16.msra.mxu0 %v1795_v51  ;;  %373 = vmatprep.mubr.bf16.mxu0 %v1825_v18 }
  0xfb   :  { %442 = vmatprep.subr.bf16.mxu0 %v1800_v53 }
  0xfe   :  { %443 = vmatpush1.bf16.msra.mxu0 %v1798_v54 }
  0xff   :  { %444 = vmatprep.subr.bf16.mxu0 %v1803_v55 }
 0x101   :  { %1501 = vmatmul.mubr.msk.bf16.gmra.mrb[8].mxu0 %vm103_vm0, %v264_v50 }
 0x102   :  { %445 = vmatpush1.bf16.msra.mxu0 %v1801_v56  ;;  %472 = vmatprep.mubr.bf16.mxu0 %v1825_v18 }
 0x103   :  { %446 = vmatprep.subr.bf16.mxu0 %v1806_v57 }
 0x106   :  { %447 = vmatpush1.bf16.msra.mxu0 %v1804_v58 }
 0x107   :  { %981 = vmatprep.subr.bf16.mxu0 %v1811_v21  ;;  %v1128_v21 = vld [vmem:[%s2396_s15 + $0x10] sm:$0xff] }
 0x109   :  { %1512 = vmatmul.mubr.msk.bf16.vlgmr.msra.gmra.mrb[4].mxu0 %vm103_vm0, %v1807_v59 }
 0x10a   :  { %482 = vmatprep.mubr.bf16.mxu0 %v1825_v18 }
 0x111   :  { %1513 = vmatmul.mubr.msk.bf16.gmra.mrb[8].mxu0 %vm103_vm0, %v1808_v60 }
 0x112   :  { %1013 = vmatprep.mubr.bf16.mxu0 %v1825_v18 }
 0x1dc   :  { %v474_v61 = vpop.f32.mrb[4].mxu0 }
 0x1dd   :  { %497 = vrot.lane.b32.xlu0 %v474_v61, %s1826_s6  ;;  %v476_v62 = vpop.f32.mrb[5].mxu0 }
 0x1de   :  { %v478_v63 = vpop.f32.mrb[6].mxu0  ;;  %v535_v1 = vrot.slane %v476_v62, 1 }
 0x1df   :  { %v2036_v0 = vpop.f32.mrb[7].mxu0 }
 0x1e0   :  { %v536_v2 = vrot.slane %v2036_v0, 1 }
 0x1e1   :  { %499 = vrot.lane.b32.xlu0 %v478_v63, %s1826_s6 }
 0x1e2   :  { %v537_v3 = vsel %vm534_vm1, %v535_v1, %v536_v2 }
 0x1e4   :  { %v484_v4 = vpop.f32.mrb[8].mxu0 }
 0x1e5   :  { %501 = vrot.lane.b32.xlu1 %v484_v4, %s1826_s6  ;;  %v486_v5 = vpop.f32.mrb[9].mxu0 }
 0x1e6   :  { %v488_v6 = vpop.f32.mrb[10].mxu0  ;;  %v538_v8 = vrot.slane %v486_v5, 1 }
 0x1e7   :  { %v490_v7 = vpop.f32.mrb[11].mxu0 }
 0x1e8   :  { %v539_v9 = vrot.slane %v490_v7, 1 }
 0x1e9   :  { %503 = vrot.lane.b32.xlu1 %v488_v6, %s1826_s6 }
 0x1ea   :  { %v540_v10 = vsel %vm534_vm1, %v538_v8, %v539_v9 }
 0x24f   :  { %v498_v26 = vpop.permute.xlu0 %497 }
 0x250   :  { %509 = vst.msk [vmem:[#allocation2] sm:$0xff] %vm103_vm0, %v498_v26 }
 0x253   :  { %v500_v27 = vpop.permute.xlu0 %499 }
 0x254   :  { %510 = vst.msk [vmem:[#allocation2 + $0x8] sm:$0xff] %vm103_vm0, %v500_v27 }
 0x257   :  { %v502_v28 = vpop.permute.xlu1 %501 }
 0x258   :  { %511 = vst.msk [vmem:[#allocation2 + $0x10] sm:$0xff] %vm103_vm0, %v502_v28 }
 0x25b   :  { %v513_v29 = vld [vmem:[#allocation2 + $0x1] sm:$0xff]  ;;  %v514_v30 = vld [vmem:[#allocation2 + $0x9] sm:$0x7f]  ;;  %v504_v31 = vpop.permute.xlu1 %503 }
 0x25c   :  { %v517_v32 = vadd.f32 %v513_v29, %v474_v61  ;;  %v518_v33 = vadd.f32 %v514_v30, %v478_v63  ;;  %512 = vst.msk [vmem:[#allocation2 + $0x18] sm:$0xff] %vm103_vm0, %v504_v31 }
 0x25e   :  { %521 = vst.msk [vmem:[#allocation2 + $0x1] sm:$0xff] %vm103_vm0, %v517_v32  ;;  %v748_v32 = vld [vmem:[%s2394_s9] sm:$0x1] }
 0x25f   :  { %523 = vst.msk [vmem:[#allocation2 + $0x9] sm:$0x7f] %vm522_vm3, %v518_v33 }
 0x263   :  { %v515_v34 = vld [vmem:[#allocation2 + $0x11] sm:$0xff]  ;;  %v516_v35 = vld [vmem:[#allocation2 + $0x19] sm:$0x7f] }
 0x264   :  { %v519_v36 = vadd.f32 %v515_v34, %v484_v4  ;;  %v520_v37 = vadd.f32 %v516_v35, %v488_v6  ;;  %v750_v35 = vld [vmem:[%s2395_s10] sm:$0x1] }
 0x265   :  { %v526_v38 = vld [vmem:[#allocation2] sm:$0xff] }
 0x266   :  { %v527_v39 = vld [vmem:[#allocation2 + $0x8] sm:$0x7f]  ;;  %v545_v40 = vadd.f32 %v537_v3, %v526_v38  ;;  %524 = vst.msk [vmem:[#allocation2 + $0x11] sm:$0xff] %vm103_vm0, %v519_v36  ;;  %v1814_v38 = vld [vmem:[%s2393_s8 + $0x14] ss:$8 sps:$4 sm:$0xff]  }
 0x267   :  { %v546_v41 = vadd.f32 %v536_v2, %v527_v39  ;;  %525 = vst.msk [vmem:[#allocation2 + $0x19] sm:$0x7f] %vm522_vm3, %v520_v37  ;;  %v1812_v39 = vld [vmem:[%s2393_s8 + $0x10] ss:$8 sps:$4 sm:$0xff]  }
 0x268   :  { %549 = vst.msk [vmem:[#allocation2] sm:$0xff] %vm103_vm0, %v545_v40  ;;  %v1817_v40 = vld [vmem:[%s2393_s8 + $0x24] ss:$8 sps:$4 sm:$0xff]  }
 0x269   :  { %550 = vst.msk [vmem:[#allocation2 + $0x8] sm:$0x7f] %vm522_vm3, %v546_v41  ;;  %v1815_v41 = vld [vmem:[%s2393_s8 + $0x20] ss:$8 sps:$4 sm:$0xff]  }
 0x26d   :  { %v528_v42 = vld [vmem:[#allocation2 + $0x10] sm:$0xff] }
 0x26e   :  { %v529_v43 = vld [vmem:[#allocation2 + $0x18] sm:$0x7f]  ;;  %v547_v44 = vadd.f32 %v540_v10, %v528_v42 }
 0x26f   :  { %v548_v45 = vadd.f32 %v539_v9, %v529_v43  ;;  %v2097_v46 = vld [vmem:[#allocation2] sm:$0xff]  ;;  %v1820_v42 = vld [vmem:[%s2393_s8 + $0x34] ss:$8 sps:$4 sm:$0xff]   ;;  %v1818_v43 = vld [vmem:[%s2393_s8 + $0x30] ss:$8 sps:$4 sm:$0xff]  }
 0x270   :  { %v2099_v47 = vld [vmem:[#allocation2 + $0x8] sm:$0xff]  ;;  %551 = vst.msk [vmem:[#allocation2 + $0x10] sm:$0xff] %vm103_vm0, %v547_v44  ;;  %v570_v48 = vmul.f32 %v2097_v46, %v2097_v46  ;;  %v557_v50 = vsel %vm103_vm0, %v2097_v46, 0.0  ;;  %v905_v44 = vlaneseq }
 0x271   :  { %552 = vst.msk [vmem:[#allocation2 + $0x18] sm:$0x7f] %vm522_vm3, %v548_v45  ;;  %v571_v49 = vmul.f32 %v2099_v47, %v2099_v47  ;;  %v558_v51 = vsel %vm103_vm0, %v2099_v47, 0.0 }
 0x272   :  { %v574_v52 = vsel %vm103_vm0, %v570_v48, 0.0  ;;  %v559_v56 = vadd.f32 %v558_v51, %v557_v50  ;;  %v906_v45 = vshrl.u32 %v905_v44, 7 }
 0x273   :  { %v575_v53 = vsel %vm103_vm0, %v571_v49, 0.0 }
 0x274   :  { %v576_v60 = vadd.f32 %v575_v53, %v574_v52  ;;  %v2185_v48 = vsub.s32 0, %v906_v45 }
 0x277   :  { %v2113_v54 = vld [vmem:[#allocation2 + $0x10] sm:$0xff] }
 0x278   :  { %v2115_v55 = vld [vmem:[#allocation2 + $0x18] sm:$0xff]  ;;  %v560_v57 = vsel %vm103_vm0, %v2113_v54, 0.0  ;;  %v572_v58 = vmul.f32 %v2113_v54, %v2113_v54 }
 0x279   :  { %v561_v59 = vadd.f32 %v560_v57, %v559_v56  ;;  %v562_v61 = vsel %vm103_vm0, %v2115_v55, 0.0  ;;  %v573_v62 = vmul.f32 %v2115_v55, %v2115_v55 }
 0x27a   :  { %v577_v63 = vsel %vm103_vm0, %v572_v58, 0.0 }
 0x27b   :  { %v563_v0 = vadd.f32 %v562_v61, %v561_v59  ;;  %v578_v1 = vadd.f32 %v577_v63, %v576_v60  ;;  %v579_v3 = vsel %vm103_vm0, %v573_v62, 0.0 }
 0x27d   :  { %v564_v2 = vrot.slane %v563_v0, 4  ;;  %v580_v5 = vadd.f32 %v579_v3, %v578_v1 }
 0x27f   :  { %v565_v4 = vadd.f32 %v564_v2, %v563_v0  ;;  %v581_v8 = vrot.slane %v580_v5, 4 }
 0x281   :  { %v566_v6 = vrot.slane %v565_v4, 2  ;;  %v582_v12 = vadd.f32 %v581_v8, %v580_v5 }
 0x283   :  { %v567_v7 = vadd.f32 %v566_v6, %v565_v4  ;;  %v583_v13 = vrot.slane %v582_v12, 2 }
 0x285   :  { %v568_v9 = vrot.slane %v567_v7, 1  ;;  %v584_v14 = vadd.f32 %v583_v13, %v582_v12 }
 0x287   :  { %v569_v10 = vadd.f32 %v568_v9, %v567_v7  ;;  %v585_v17 = vrot.slane %v584_v14, 1 }
 0x289   :  { %1633 = vmatmul.mubr.msk.f32.vlgmr.msra.gmra.mrb[4].mxu1 %vm103_vm0, %v569_v10  ;;  %v586_v20 = vadd.f32 %v585_v17, %v584_v14 }
 0x28a   :  { %1726 = vmatpush3.bf16.msra.mxu1 %v2056_v16  ;;  %1651 = vmatprep.mubr.msk.f32.mxu1 %vm1828_vm2, %v1829_v15  ;;  %v753_v16 = vld [vmem:[%s2392_s14] sm:$0xf] }
 0x28b   :  { %1727 = vmatprep.subr.bf16.mxu1 %v1827_v11 }
 0x28e   :  { %1729 = vmatpush3.bf16.msra.mxu1 %v2062_v19  ;;  %v1809_v19 = vld [vmem:[%s2393_s8] ss:$8 sps:$4 sm:$0xff]  }
 0x28f   :  { %1730 = vmatprep.subr.bf16.mxu1 %v1827_v11  ;;  %982 = vmatpush1.bf16.msra.mxu0 %v1809_v19  ;;  %v1127_v19 = vld [vmem:[%s2396_s15 + $0x8] sm:$0xff] }
 0x290   :  { %983 = vmatprep.subr.bf16.mxu0 %v1814_v38 }
 0x292   :  { %1732 = vmatpush3.bf16.msra.mxu1 %v2072_v22 }
 0x293   :  { %1733 = vmatprep.subr.bf16.mxu1 %v1827_v11  ;;  %984 = vmatpush1.bf16.msra.mxu0 %v1812_v39 }
 0x294   :  { %985 = vmatprep.subr.bf16.mxu0 %v1817_v40 }
 0x296   :  { %1735 = vmatpush3.bf16.msra.mxu1 %v2082_v25 }
 0x297   :  { %1654 = vmatprep.subr.mxu1 %v1829_v15  ;;  %986 = vmatpush1.bf16.msra.mxu0 %v1815_v41 }
 0x298   :  { %987 = vmatprep.subr.bf16.mxu0 %v1820_v42 }
 0x299   :  { %1652 = vmatmul.mubr.msk.f32.vlgmr.msra.gmra.mrb[6].mxu1 %vm103_vm0, %v586_v20 }
 0x29a   :  { %1656 = vmatprep.mubr.msk.f32.mxu1 %vm1828_vm2, %v1829_v15  ;;  %1655 = vmatpush3.msk.msra.mxu1 %vm758_vm4, %v753_v16 }
 0x29b   :  { %1659 = vmatprep.subr.mxu1 %v1829_v15  ;;  %988 = vmatpush1.bf16.msra.mxu0 %v1818_v43 }
 0x29c   :  { %1748 = vmatprep.subr.bf16.mxu0 %v1827_v11 }
 0x35c   :  { %v664_v22 = vpop.f32.mrb[4].mxu1 }
 0x35d   :  { %v1634_v23 = vpop.f32.mrb[5].mxu1  ;;  %v668_v24 = vmul.f32 0.001953125, %v664_v22 }
 0x35e   :  { %v1129_v23 = vld [vmem:[%s2396_s15 + $0x18] sm:$0xff] }
 0x35f   :  { %v743_v26 = vmul.f32 %v668_v24, %v668_v24 }
 0x36c   :  { %v738_v25 = vpop.f32.mrb[6].mxu1 }
 0x36d   :  { %v742_v27 = vmul.f32 0.001953125, %v738_v25  ;;  %v1653_v28 = vpop.f32.mrb[7].mxu1  ;;  %v1130_v25 = vld [vmem:[%s2396_s15 + $0x20] sm:$0xff] }
 0x36e   :  { %v1132_v28 = vld [vmem:[%s2396_s15 + $0x30] sm:$0xff] }
 0x36f   :  { %v744_v29 = vsub.f32 %v742_v27, %v743_v26  ;;  %v1131_v26 = vld [vmem:[%s2396_s15 + $0x28] sm:$0xff] }
 0x370   :  { %v1743_v27 = vpack.c.bf16 %v1131_v26, %v1130_v25 }
 0x371   :  { %v745_v30 = vmax.f32 %v744_v29, 0.0  ;;  %v1133_v29 = vld [vmem:[%s2396_s15 + $0x38] sm:$0xff] }
 0x373   :  { %v746_v31 = vadd.f32 1e-05, %v745_v30  ;;  %v1746_v30 = vpack.c.bf16 %v1133_v29, %v1132_v28 }
 0x375   :  { %1821 = vrsqrt.f32 %v746_v31 }
 0x37f   :  { %v1822_v33 = vpop.eup %1821 }
 0x380   :  { %v749_v34 = vmul.f32 %v1822_v33, %v748_v32 }
 0x382   :  { %1657 = vmatmul.mubr.msk.f32.vlgmr.msra.gmra.mrb[8].mxu1 %vm754_vm5, %v749_v34  ;;  %v751_v36 = vmul.f32 %v749_v34, %v668_v24  ;;  %v1740_v24 = vpack.c.bf16 %v1129_v23, %v1128_v21  ;;  %v1292_v23 = vld [vmem:[%s2398_s16] sm:$0xf] }
 0x383   :  { %1660 = vmatpush3.msk.msra.mxu1 %vm758_vm4, %v753_v16  ;;  %1661 = vmatprep.mubr.msk.f32.mxu1 %vm1828_vm2, %v1829_v15  ;;  %v1126_v16 = vld [vmem:[%s2396_s15] sm:$0xff] }
 0x384   :  { %v752_v37 = vsub.f32 %v750_v35, %v751_v36  ;;  %1736 = vmatprep.subr.bf16.mxu1 %v1827_v11  ;;  %v1737_v22 = vpack.c.bf16 %v1127_v19, %v1126_v16 }
 0x386   :  { %1662 = vmatmul.mubr.msk.f32.vlgmr.msra.gmra.mrb[10].mxu1 %vm754_vm5, %v752_v37 }
 0x387   :  { %1680 = vmatprep.mubr.msk.f32.mxu1 %vm1828_vm2, %v1829_v15  ;;  %1738 = vmatpush3.bf16.msra.mxu1 %v1737_v22 }
 0x388   :  { %1739 = vmatprep.subr.bf16.mxu1 %v1827_v11 }
 0x38b   :  { %1741 = vmatpush3.bf16.msra.mxu1 %v1740_v24 }
 0x38c   :  { %1742 = vmatprep.subr.bf16.mxu1 %v1827_v11 }
 0x38f   :  { %1744 = vmatpush3.bf16.msra.mxu1 %v1743_v27 }
 0x390   :  { %1745 = vmatprep.subr.bf16.mxu1 %v1827_v11 }
 0x393   :  { %1747 = vmatpush3.bf16.msra.mxu1 %v1746_v30 }
 0x394   :  { %1702 = vmatprep.subr.mxu1 %v1829_v15 }
 0x455   :  { %v828_v49 = vpop.f32.mrb[8].mxu1 }
 0x456   :  { %v908_v50 = vrot.slane %v828_v49, %v2185_v48  ;;  %v1658_v51 = vpop.f32.mrb[9].mxu1 }
 0x458   :  { %v909_v52 = vmul.f32 %v908_v50, %v2097_v46  ;;  %v910_v56 = vmul.f32 %v908_v50, %v2099_v47  ;;  %v911_v57 = vmul.f32 %v908_v50, %v2113_v54  ;;  %v912_v58 = vmul.f32 %v908_v50, %v2115_v55 }
 0x459   :  { %v901_v53 = vpop.f32.mrb[10].mxu1 }
 0x45a   :  { %v916_v59 = vrot.slane %v901_v53, %v2185_v48  ;;  %v1663_v60 = vpop.f32.mrb[11].mxu1 }
 0x45c   :  { %v917_v61 = vadd.f32 %v916_v59, %v909_v52  ;;  %v918_v62 = vadd.f32 %v916_v59, %v910_v56  ;;  %v919_v63 = vadd.f32 %v916_v59, %v911_v57  ;;  %v920_v0 = vadd.f32 %v916_v59, %v912_v58 }
 0x45e   :  { %v921_v1 = vmax.f32 %v917_v61, 0.0  ;;  %v922_v2 = vmax.f32 %v918_v62, 0.0  ;;  %v923_v3 = vmax.f32 %v919_v63, 0.0  ;;  %v924_v4 = vmax.f32 %v920_v0, 0.0 }
 0x460   :  { %v925_v5 = vpack.c.bf16 %v922_v2, %v921_v1  ;;  %v926_v46 = vpack.c.bf16 %v924_v4, %v923_v3 }
 0x462   :  { %1528 = vmatmul.mubr.msk.bf16.vlgmr.msra.gmra.mrb[12].mxu0 %vm103_vm0, %v925_v5 }
 0x463   :  { %1023 = vmatprep.mubr.bf16.mxu0 %v1825_v18  ;;  %1750 = vmatpush3.bf16.msra.mxu0 %v1737_v22 }
 0x464   :  { %1751 = vmatprep.subr.bf16.mxu0 %v1827_v11 }
 0x467   :  { %1753 = vmatpush3.bf16.msra.mxu0 %v1740_v24 }
 0x468   :  { %1754 = vmatprep.subr.bf16.mxu0 %v1827_v11 }
 0x46a   :  { %1529 = vmatmul.mubr.msk.bf16.gmra.mrb[16].mxu0 %vm103_vm0, %v926_v46 }
 0x46b   :  { %1699 = vmatprep.mubr.msk.f32.mxu0 %vm1828_vm2, %v1829_v15  ;;  %1756 = vmatpush3.bf16.msra.mxu0 %v1743_v27 }
 0x46c   :  { %1757 = vmatprep.subr.bf16.mxu0 %v1827_v11 }
 0x46f   :  { %1759 = vmatpush3.bf16.msra.mxu0 %v1746_v30 }
 0x535   :  { %v1015_v47 = vpop.f32.mrb[12].mxu0 }
 0x536   :  { %1038 = vrot.lane.b32.xlu0 %v1015_v47, %s1826_s6  ;;  %v1017_v54 = vpop.f32.mrb[13].mxu0 }
 0x537   :  { %v1019_v55 = vpop.f32.mrb[14].mxu0  ;;  %v1074_v7 = vrot.slane %v1017_v54, 1 }
 0x538   :  { %1040 = vrot.lane.b32.xlu1 %v1019_v55, %s1826_s6  ;;  %v2200_v6 = vpop.f32.mrb[15].mxu0 }
 0x539   :  { %v1075_v8 = vrot.slane %v2200_v6, 1 }
 0x53b   :  { %v1076_v9 = vsel %vm534_vm1, %v1074_v7, %v1075_v8 }
 0x53d   :  { %v1025_v18 = vpop.f32.mrb[16].mxu0 }
 0x53e   :  { %1042 = vrot.lane.b32.xlu0 %v1025_v18, %s1826_s6  ;;  %v1027_v10 = vpop.f32.mrb[17].mxu0 }
 0x53f   :  { %v1029_v12 = vpop.f32.mrb[18].mxu0  ;;  %v1077_v14 = vrot.slane %v1027_v10, 1 }
 0x540   :  { %1044 = vrot.lane.b32.xlu1 %v1029_v12, %s1826_s6  ;;  %v2206_v13 = vpop.f32.mrb[19].mxu0 }
 0x541   :  { %v1078_v17 = vrot.slane %v2206_v13, 1 }
 0x543   :  { %v1079_v20 = vsel %vm534_vm1, %v1077_v14, %v1078_v17 }
 0x5a8   :  { %v1039_v31 = vpop.permute.xlu0 %1038 }
 0x5a9   :  { %1050 = vst.msk [vmem:[%s2397_s17] sm:$0xff] %vm103_vm0, %v1039_v31 }
 0x5aa   :  { %v1041_v32 = vpop.permute.xlu1 %1040 }
 0x5ab   :  { %1051 = vst.msk [vmem:[%s2397_s17 + $0x8] sm:$0xff] %vm103_vm0, %v1041_v32 }
 0x5b0   :  { %v1043_v33 = vpop.permute.xlu0 %1042 }
 0x5b1   :  { %1052 = vst.msk [vmem:[%s2397_s17 + $0x10] sm:$0xff] %vm103_vm0, %v1043_v33 }
 0x5b2   :  { %v1054_v11 = vld [vmem:[%s2397_s17 + $0x1] sm:$0xff]  ;;  %v1055_v34 = vld [vmem:[%s2397_s17 + $0x9] sm:$0x7f]  ;;  %v1045_v35 = vpop.permute.xlu1 %1044 }
 0x5b3   :  { %v1058_v36 = vadd.f32 %v1054_v11, %v1015_v47  ;;  %v1059_v37 = vadd.f32 %v1055_v34, %v1019_v55  ;;  %1053 = vst.msk [vmem:[%s2397_s17 + $0x18] sm:$0xff] %vm103_vm0, %v1045_v35  ;;  %v1287_v11 = vld [vmem:[%s2399_s11] sm:$0x1] }
 0x5b5   :  { %1062 = vst.msk [vmem:[%s2397_s17 + $0x1] sm:$0xff] %vm103_vm0, %v1058_v36  ;;  %v1289_v36 = vld [vmem:[%s2400_s12] sm:$0x1] }
 0x5b6   :  { %1063 = vst.msk [vmem:[%s2397_s17 + $0x9] sm:$0x7f] %vm522_vm3, %v1059_v37 }
 0x5ba   :  { %v1056_v38 = vld [vmem:[%s2397_s17 + $0x11] sm:$0xff]  ;;  %v1057_v39 = vld [vmem:[%s2397_s17 + $0x19] sm:$0x7f] }
 0x5bb   :  { %v1060_v40 = vadd.f32 %v1056_v38, %v1025_v18  ;;  %v1061_v41 = vadd.f32 %v1057_v39, %v1029_v12 }
 0x5bc   :  { %v1066_v42 = vld [vmem:[%s2397_s17] sm:$0xff] }
 0x5bd   :  { %v1067_v43 = vld [vmem:[%s2397_s17 + $0x8] sm:$0x7f]  ;;  %v1084_v44 = vadd.f32 %v1076_v9, %v1066_v42  ;;  %1064 = vst.msk [vmem:[%s2397_s17 + $0x11] sm:$0xff] %vm103_vm0, %v1060_v40 }
 0x5be   :  { %v1085_v45 = vadd.f32 %v1075_v8, %v1067_v43  ;;  %1065 = vst.msk [vmem:[%s2397_s17 + $0x19] sm:$0x7f] %vm522_vm3, %v1061_v41 }
 0x5bf   :  { %1088 = vst.msk [vmem:[%s2397_s17] sm:$0xff] %vm103_vm0, %v1084_v44 }
 0x5c0   :  { %1089 = vst.msk [vmem:[%s2397_s17 + $0x8] sm:$0x7f] %vm522_vm3, %v1085_v45 }
 0x5c4   :  { %v1068_v49 = vld [vmem:[%s2397_s17 + $0x10] sm:$0xff] }
 0x5c5   :  { %v1069_v50 = vld [vmem:[%s2397_s17 + $0x18] sm:$0x7f]  ;;  %v1086_v51 = vadd.f32 %v1079_v20, %v1068_v49 }
 0x5c6   :  { %v1087_v52 = vadd.f32 %v1078_v17, %v1069_v50  ;;  %v2308_v53 = vld [vmem:[%s2397_s17] sm:$0xff] }
 0x5c7   :  { %v2313_v56 = vld [vmem:[%s2397_s17 + $0x8] sm:$0xff]  ;;  %1090 = vst.msk [vmem:[%s2397_s17 + $0x10] sm:$0xff] %vm103_vm0, %v1086_v51  ;;  %v1109_v57 = vmul.f32 %v2308_v53, %v2308_v53  ;;  %v1096_v59 = vsel %vm103_vm0, %v2308_v53, 0.0 }
 0x5c8   :  { %1091 = vst.msk [vmem:[%s2397_s17 + $0x18] sm:$0x7f] %vm522_vm3, %v1087_v52  ;;  %v1110_v58 = vmul.f32 %v2313_v56, %v2313_v56  ;;  %v1097_v60 = vsel %vm103_vm0, %v2313_v56, 0.0 }
 0x5c9   :  { %v1113_v61 = vsel %vm103_vm0, %v1109_v57, 0.0  ;;  %v1098_v1 = vadd.f32 %v1097_v60, %v1096_v59 }
 0x5ca   :  { %v1114_v62 = vsel %vm103_vm0, %v1110_v58, 0.0 }
 0x5cb   :  { %v1115_v46 = vadd.f32 %v1114_v62, %v1113_v61 }
 0x5ce   :  { %v1094_v63 = vld [vmem:[%s2397_s17 + $0x10] sm:$0xff] }
 0x5cf   :  { %v1095_v0 = vld [vmem:[%s2397_s17 + $0x18] sm:$0xff]  ;;  %v1099_v2 = vsel %vm103_vm0, %v1094_v63, 0.0  ;;  %v1111_v3 = vmul.f32 %v1094_v63, %v1094_v63 }
 0x5d0   :  { %v1112_v4 = vmul.f32 %v1095_v0, %v1095_v0  ;;  %v1100_v5 = vadd.f32 %v1099_v2, %v1098_v1  ;;  %v1101_v47 = vsel %vm103_vm0, %v1095_v0, 0.0 }
 0x5d1   :  { %v1116_v54 = vsel %vm103_vm0, %v1111_v3, 0.0 }
 0x5d2   :  { %v1102_v55 = vadd.f32 %v1101_v47, %v1100_v5  ;;  %v1117_v6 = vadd.f32 %v1116_v54, %v1115_v46  ;;  %v1118_v7 = vsel %vm103_vm0, %v1112_v4, 0.0 }
 0x5d4   :  { %v1103_v8 = vrot.slane %v1102_v55, 4  ;;  %v1119_v9 = vadd.f32 %v1118_v7, %v1117_v6 }
 0x5d6   :  { %v1104_v18 = vadd.f32 %v1103_v8, %v1102_v55  ;;  %v1120_v10 = vrot.slane %v1119_v9, 4 }
 0x5d8   :  { %v1105_v12 = vrot.slane %v1104_v18, 2  ;;  %v1121_v13 = vadd.f32 %v1120_v10, %v1119_v9 }
 0x5da   :  { %v1106_v14 = vadd.f32 %v1105_v12, %v1104_v18  ;;  %v1122_v17 = vrot.slane %v1121_v13, 2 }
 0x5dc   :  { %v1107_v20 = vrot.slane %v1106_v14, 1  ;;  %v1123_v16 = vadd.f32 %v1122_v17, %v1121_v13 }
 0x5de   :  { %v1108_v19 = vadd.f32 %v1107_v20, %v1106_v14  ;;  %v1124_v21 = vrot.slane %v1123_v16, 1 }
 0x5e0   :  { %1681 = vmatmul.mubr.msk.f32.vlgmr.msra.gmra.mrb[12].mxu1 %vm103_vm0, %v1108_v19  ;;  %v1125_v22 = vadd.f32 %v1124_v21, %v1123_v16 }
 0x5e1   :  { %1704 = vmatprep.mubr.msk.f32.mxu1 %vm1828_vm2, %v1829_v15  ;;  %1703 = vmatpush3.msk.msra.mxu1 %vm758_vm4, %v1292_v23 }
 0x5e2   :  { %1700 = vmatmul.mubr.msk.f32.vlgmr.msra.gmra.mrb[20].mxu0 %vm103_vm0, %v1125_v22  ;;  %1707 = vmatprep.subr.mxu1 %v1829_v15 }
 0x6b3   :  { %v1203_v24 = vpop.f32.mrb[12].mxu1 }
 0x6b4   :  { %v1207_v25 = vmul.f32 0.001953125, %v1203_v24  ;;  %v1682_v26 = vpop.f32.mrb[13].mxu1 }
 0x6b5   :  { %v1277_v27 = vpop.f32.mrb[20].mxu0 }
 0x6b6   :  { %v1282_v28 = vmul.f32 %v1207_v25, %v1207_v25  ;;  %v1281_v29 = vmul.f32 0.001953125, %v1277_v27  ;;  %v1701_v30 = vpop.f32.mrb[21].mxu0 }
 0x6b8   :  { %v1283_v31 = vsub.f32 %v1281_v29, %v1282_v28 }
 0x6ba   :  { %v1284_v32 = vmax.f32 %v1283_v31, 0.0 }
 0x6bc   :  { %v1285_v33 = vadd.f32 1e-05, %v1284_v32 }
 0x6be   :  { %1823 = vrsqrt.f32 %v1285_v33 }
 0x6c8   :  { %v1824_v34 = vpop.eup %1823 }
 0x6c9   :  { %v1288_v35 = vmul.f32 %v1824_v34, %v1287_v11 }
 0x6cb   :  { %1705 = vmatmul.mubr.msk.f32.vlgmr.msra.gmra.mrb[14].mxu1 %vm754_vm5, %v1288_v35  ;;  %v1290_v37 = vmul.f32 %v1288_v35, %v1207_v25 }
 0x6cc   :  { %1708 = vmatpush3.msk.msra.mxu1 %vm758_vm4, %v1292_v23  ;;  %1709 = vmatprep.mubr.msk.f32.mxu1 %vm1828_vm2, %v1829_v15 }
 0x6cd   :  { %v1291_v38 = vsub.f32 %v1289_v36, %v1290_v37 }
 0x6cf   :  { %1710 = vmatmul.mubr.msk.f32.vlgmr.msra.gmra.mrb[16].mxu1 %vm754_vm5, %v1291_v38 }
 0x79e   :  { %v1365_v39 = vpop.f32.mrb[14].mxu1 }
 0x79f   :  { %v1445_v40 = vrot.slane %v1365_v39, %v2185_v48  ;;  %v1706_v41 = vpop.f32.mrb[15].mxu1 }
 0x7a1   :  { %v1446_v42 = vmul.f32 %v1445_v40, %v2308_v53  ;;  %v1447_v44 = vmul.f32 %v1445_v40, %v2313_v56  ;;  %v1448_v45 = vmul.f32 %v1445_v40, %v1094_v63  ;;  %v1449_v49 = vmul.f32 %v1445_v40, %v1095_v0 }
 0x7a2   :  { %v1438_v43 = vpop.f32.mrb[16].mxu1 }
 0x7a3   :  { %v1453_v50 = vrot.slane %v1438_v43, %v2185_v48  ;;  %v1711_v51 = vpop.f32.mrb[17].mxu1 }
 0x7a5   :  { %v1454_v52 = vadd.f32 %v1453_v50, %v1446_v42  ;;  %v1455_v57 = vadd.f32 %v1453_v50, %v1447_v44  ;;  %v1456_v15 = vadd.f32 %v1453_v50, %v1448_v45  ;;  %v1457_v58 = vadd.f32 %v1453_v50, %v1449_v49 }
 0x7a7   :  { %v1458_v59 = vmax.f32 %v1454_v52, 0.0  ;;  %v1459_v60 = vmax.f32 %v1455_v57, 0.0  ;;  %v1460_v61 = vmax.f32 %v1456_v15, 0.0  ;;  %v1461_v62 = vmax.f32 %v1457_v58, 0.0 }
 0x7a9   :  { %1462 = vst.msk [vmem:[%s2397_s17] sm:$0xff] %vm103_vm0, %v1458_v59  ;;  %1463 = vst.msk [vmem:[%s2397_s17 + $0x8] sm:$0xff] %vm103_vm0, %v1459_v60 }
 0x7aa   :  { %1464 = vst.msk [vmem:[%s2397_s17 + $0x10] sm:$0xff] %vm103_vm0, %v1460_v61  ;;  %1465 = vst.msk [vmem:[%s2397_s17 + $0x18] sm:$0xff] %vm103_vm0, %v1461_v62 }

</bundles_post_ra>
